<compile_context>
chip_gen: v6e
topology: v6e:2x2x1
jax: 0.10.0
libtpu: 0.0.40
codegen_flags: <defaults>
</compile_context>

<pallas_src>
import jax
import jax.numpy as jnp
from jax.experimental import pallas as pl
from jax.experimental.pallas import tpu as pltpu

_LANE = 128  # TPU lane width (last-dim vector width)


def _round_up(n, m):
    return pl.cdiv(n, m) * m


def pack_params(w1, b1, w2, b2):
    """One-time packing of nn.Linear params (PyTorch layout) into 2 VMEM buffers.

    w1: (hidden, obs), b1: (hidden,), w2: (n_actions, hidden), b2: (n_actions,)
    Returns:
      p1: (obs+1, hidden)       rows [0:obs] = w1.T, row obs = b1
      p2: (hidden+1, n_pad)     rows [0:hidden] = w2.T, row hidden = b2,
                                out-feature dim zero-padded to a multiple of 128
      n_actions: true (unpadded) number of actions
    """
    w1 = jnp.asarray(w1, jnp.float32)
    b1 = jnp.asarray(b1, jnp.float32).reshape(1, -1)
    w2 = jnp.asarray(w2, jnp.float32)
    b2 = jnp.asarray(b2, jnp.float32).reshape(1, -1)
    p1 = jnp.concatenate([w1.T, b1], axis=0)          # (obs+1, hidden)
    p2 = jnp.concatenate([w2.T, b2], axis=0)          # (hidden+1, n_actions)
    n_actions = p2.shape[1]
    pad = _round_up(n_actions, _LANE) - n_actions
    if pad:
        p2 = jnp.pad(p2, ((0, 0), (0, pad)))          # zero cols -> zero logits, sliced off
    return p1, p2, n_actions


def _mlp_math(x_ref, p1_ref, p2_ref):
    """Fused matmul -> bias -> ReLU -> matmul -> bias on one VMEM-resident tile."""
    obs = p1_ref.shape[0] - 1
    hidden = p2_ref.shape[0] - 1
    x = x_ref[...]                                     # (rows, obs)
    w1 = p1_ref[:obs, :]                               # (obs, hidden)   static view
    b1 = p1_ref[obs:obs + 1, :]                        # (1, hidden)
    h = jnp.maximum(jnp.dot(x, w1, preferred_element_type=jnp.float32) + b1, 0.0)
    w2 = p2_ref[:hidden, :]                            # (hidden, n_pad)
    b2 = p2_ref[hidden:hidden + 1, :]                  # (1, n_pad)
    return jnp.dot(h, w2, preferred_element_type=jnp.float32) + b2   # (rows, n_pad)


def mlp_kernel_small(x_ref, p1_ref, p2_ref, o_ref):
    # Latency path: whole batch in VMEM, output kept as (B, n_actions).
    n_actions = o_ref.shape[1]
    o = _mlp_math(x_ref, p1_ref, p2_ref)
    o_ref[...] = o[:, :n_actions].astype(o_ref.dtype)


def mlp_kernel_tiled(x_ref, p1_ref, p2_ref, o_ref):
    # Throughput path: lane-dense output block (n_actions, block_rows).
    n_actions = o_ref.shape[0]
    o = _mlp_math(x_ref, p1_ref, p2_ref)               # (block_rows, n_pad), both mult. of 128/8
    o_t = o.T                                          # fully tile-aligned XLU transpose
    o_ref[...] = o_t[:n_actions, :].astype(o_ref.dtype)


def net_forward(x, p1, p2, n_actions, *, block_b=2048, gridless_max_batch=256):
    """Forward pass of Net on packed params. Returns (B, n_actions) float32."""
    B, obs = x.shape
    assert p1.shape[0] == obs + 1, "packed p1 does not match x's feature dim"

    if B <= gridless_max_batch:
        # Latency path (typical FrozenLake batches): no grid, no pipeline bookkeeping,
        # 3 whole-array operands resident in VMEM.
        return pl.pallas_call(
            mlp_kernel_small,
            out_shape=jax.ShapeDtypeStruct((B, n_actions), jnp.float32),
            in_specs=[
                pl.BlockSpec(memory_space=pltpu.MemorySpace.VMEM),
                pl.BlockSpec(memory_space=pltpu.MemorySpace.VMEM),
                pl.BlockSpec(memory_space=pltpu.MemorySpace.VMEM),
            ],
            out_specs=pl.BlockSpec(memory_space=pltpu.MemorySpace.VMEM),
        )(x, p1, p2)

    # Throughput path: cdiv grid over batch rows (last block padded & masked by Pallas),
    # weights resident across steps, >=2 blocks so v7x megacore can split them.
    block_b = max(_LANE, _round_up(block_b, _LANE))
    bb = min(block_b, _round_up(pl.cdiv(B, 2), _LANE))   # multiple of 128 -> lane-dense out
    grid = (pl.cdiv(B, bb),)

    out_t = pl.pallas_call(
        mlp_kernel_tiled,
        out_shape=jax.ShapeDtypeStruct((n_actions, B), jnp.float32),  # transposed, lane = batch
        grid=grid,
        in_specs=[
            pl.BlockSpec((bb, obs), lambda i: (i, 0)),     # x rows, tiled
            pl.BlockSpec(p1.shape, lambda i: (0, 0)),      # weights resident
            pl.BlockSpec(p2.shape, lambda i: (0, 0)),
        ],
        out_specs=pl.BlockSpec((n_actions, bb), lambda i: (0, i)),
        compiler_params=pltpu.CompilerParams(
            dimension_semantics=("parallel",)),            # v7x: 2 TCs split the grid
    )(x, p1, p2)
    return out_t.T                                          # back to module layout (B, n_actions)


if __name__ == "__main__":
    # FrozenLake-style sizes: obs_size=16 (one-hot state), hidden=32, n_actions=4.
    batch, obs_size, hidden_size, n_actions = 8, 16, 32, 4

    key = jax.random.PRNGKey(0)
    k_x, k_w1, k_b1, k_w2, k_b2, k_xl = jax.random.split(key, 6)

    x = jax.random.normal(k_x, (batch, obs_size), dtype=jnp.float32)
    # Parameters in PyTorch nn.Linear layout: weight (out, in), bias (out,).
    w1 = jax.random.normal(k_w1, (hidden_size, obs_size), dtype=jnp.float32) * 0.1
    b1 = jax.random.normal(k_b1, (hidden_size,), dtype=jnp.float32) * 0.1
    w2 = jax.random.normal(k_w2, (n_actions, hidden_size), dtype=jnp.float32) * 0.1
    b2 = jax.random.normal(k_b2, (n_actions,), dtype=jnp.float32) * 0.1

    # One-time packing (outside the hot loop).
    p1, p2, n_act = pack_params(w1, b1, w2, b2)

    def ref_fwd(xx):
        h = jnp.maximum(
            jnp.dot(xx, w1.T, precision=jax.lax.Precision.HIGHEST) + b1, 0.0)
        return jnp.dot(h, w2.T, precision=jax.lax.Precision.HIGHEST) + b2

    # 1) Small-batch latency path (gridless, all operands whole in VMEM).
    out_small = net_forward(x, p1, p2, n_act)
    jax.block_until_ready(out_small)
    assert out_small.shape == (batch, n_actions)
    assert jnp.allclose(out_small, ref_fwd(x), atol=2e-5, rtol=1e-4)

    # 2) Throughput path: batch deliberately NOT a multiple of the block size to
    #    exercise the cdiv grid, padded last block, and the 2-way parallel split.
    big_batch = 1000
    x_big = jax.random.normal(k_xl, (big_batch, obs_size), dtype=jnp.float32)
    out_big = net_forward(x_big, p1, p2, n_act)
    jax.block_until_ready(out_big)
    assert out_big.shape == (big_batch, n_actions)
    assert jnp.allclose(out_big, ref_fwd(x_big), atol=2e-5, rtol=1e-4)

    print("KERNEL_OK")
</pallas_src>

<mosaic_0001>
module attributes {stable_mosaic.version = 11 : i64} {
  func.func @mlp_kernel_small(%arg0: memref<8x16xf32, #tpu.memory_space<vmem>>, %arg1: memref<17x32xf32, #tpu.memory_space<vmem>>, %arg2: memref<33x128xf32, #tpu.memory_space<vmem>>, %arg3: memref<8x4xf32, #tpu.memory_space<vmem>>) attributes {dimension_semantics = [], scalar_prefetch = 0 : i64, scratch_operands = 0 : i64, tpu.core_type = #tpu.core_type<tc>} {
    %c0 = arith.constant 0 : index
    %c0_0 = arith.constant 0 : index
    %0 = vector.load %arg0[%c0, %c0_0] : memref<8x16xf32, #tpu.memory_space<vmem>>, vector<8x16xf32>
    %c0_1 = arith.constant 0 : index
    %c0_2 = arith.constant 0 : index
    %1 = vector.load %arg1[%c0_1, %c0_2] : memref<17x32xf32, #tpu.memory_space<vmem>>, vector<16x32xf32>
    %c16 = arith.constant 16 : index
    %c0_3 = arith.constant 0 : index
    %2 = vector.load %arg1[%c16, %c0_3] : memref<17x32xf32, #tpu.memory_space<vmem>>, vector<1x32xf32>
    %cst = arith.constant dense<0.000000e+00> : vector<8x32xf32>
    %3 = tpu.matmul %0, %1, %cst {dimension_numbers = #tpu.dot_dimension_numbers<[1], [0], [0], [1], [0, 0, 1, 1], [], []>} : vector<8x16xf32>, vector<16x32xf32>, vector<8x32xf32> -> vector<8x32xf32>
    %4 = vector.broadcast %2 : vector<1x32xf32> to vector<8x32xf32>
    %5 = arith.addf %3, %4 : vector<8x32xf32>
    %cst_4 = arith.constant 0.000000e+00 : f32
    %6 = vector.broadcast %cst_4 : f32 to vector<8x32xf32>
    %7 = arith.maximumf %5, %6 : vector<8x32xf32>
    %c0_5 = arith.constant 0 : index
    %c0_6 = arith.constant 0 : index
    %8 = vector.load %arg2[%c0_5, %c0_6] : memref<33x128xf32, #tpu.memory_space<vmem>>, vector<32x128xf32>
    %c32 = arith.constant 32 : index
    %c0_7 = arith.constant 0 : index
    %9 = vector.load %arg2[%c32, %c0_7] : memref<33x128xf32, #tpu.memory_space<vmem>>, vector<1x128xf32>
    %cst_8 = arith.constant dense<0.000000e+00> : vector<8x128xf32>
    %10 = tpu.matmul %7, %8, %cst_8 {dimension_numbers = #tpu.dot_dimension_numbers<[1], [0], [0], [1], [0, 0, 1, 1], [], []>} : vector<8x32xf32>, vector<32x128xf32>, vector<8x128xf32> -> vector<8x128xf32>
    %11 = vector.broadcast %9 : vector<1x128xf32> to vector<8x128xf32>
    %12 = arith.addf %10, %11 : vector<8x128xf32>
    %13 = vector.extract_strided_slice %12 {offsets = [0, 0], sizes = [8, 4], strides = [1, 1]} : vector<8x128xf32> to vector<8x4xf32>
    %c0_9 = arith.constant 0 : index
    %c0_10 = arith.constant 0 : index
    %14 = vector.load %arg3[%c0_9, %c0_10] : memref<8x4xf32, #tpu.memory_space<vmem>>, vector<8x4xf32>
    tpu.vector_store %arg3[%c0_9, %c0_10], %13 {strides = array<i32>} : memref<8x4xf32, #tpu.memory_space<vmem>>, vector<8x4xf32>,
    return
  }
}

</mosaic_0001>

<bundles_post_ra>
// kernel: tpu_custom_call.1
= control target key start
LH: loop header
LB: loop body
LE: loop exit
PB: predicated region body
PF: predicated region fallthrough
CT: control target
= control target key end

     0   :  { %8 = vsyncpa [#allocation3], 0  ;;  %s367_s0 = inlined_call_operand.hbm [shape: f32[8,16], index: 0, kind: input, shape index: {}]   ;;  %s368_s1 = inlined_call_operand.hbm [shape: f32[17,32], index: 1, kind: input, shape index: {}]   ;;  %s369_s2 = inlined_call_operand.hbm [shape: f32[33,128], index: 2, kind: input, shape index: {}]   ;;  %s370_s3 = inlined_call_operand.vmem [shape: f32[8,4], index: 3, kind: output, shape index: {}]  }
   0x1   :  { %9 = vsyncpa [#allocation5], 0  ;;  %s328_s12 = smov [#allocation4]  }
   0x2   :  { %s25_s13 = sshll.u32 %s328_s12, 4  ;;  %s26_s13 = int_to_ptr.vmem [resolvable:$true] %s25_s13 }
   0x3   :  { %s272_s14 = scalar_lea.vmem %s26_s13, 384  ;;  %p277_p1 = scmp.lt.s32.totalorder %s26_s13, %s26_s13 }
   0x4   :  { %p273_p0 = scmp.ne.s32.totalorder %s26_s13, %s272_s14  ;;  %p278_p2 = scmp.lt.s32.totalorder %s272_s14, %s272_s14 }
   0x6   :  { %p279_p3 = por %p278_p2, %p277_p1 }
   0x8   :  { %p280_p4 = pnand %p279_p3, %p273_p0 }
   0xa   :  { %283 = shalt.err (!%p280_p4)
}
   0xb   :  { %s329_s15 = smov 128   ;;  %s330_s16 = smov 8  }
   0xc   :  { %31 = dma.hbm_to_vmem [thread:$0]  %s368_s1, 384, %s26_s13, [#allocation5], %s329_s15, %s329_s15, %s330_s16  }
   0xd   :  { %s331_s19 = smov [#allocation2]   ;;  %s332_s21 = smov [#allocation6]  }
   0xe   :  { %s16_s20 = sshll.u32 %s331_s19, 4  ;;  %s37_s22 = sshll.u32 %s332_s21, 4  ;;  %s17_s20 = int_to_ptr.vmem [resolvable:$true] %s16_s20  ;;  %s38_s22 = int_to_ptr.vmem [resolvable:$true] %s37_s22 }
   0xf   :  { %s292_s23 = scalar_lea.vmem %s17_s20, 128  ;;  %p297_p6 = scmp.lt.s32.totalorder %s17_s20, %s17_s20 }
  0x10   :  { %p293_p5 = scmp.ne.s32.totalorder %s17_s20, %s292_s23  ;;  %p298_p7 = scmp.lt.s32.totalorder %s292_s23, %s292_s23 }
  0x12   :  { %p299_p8 = por %p298_p7, %p297_p6 }
  0x14   :  { %p300_p9 = pnand %p299_p8, %p293_p5 }
  0x16   :  { %303 = shalt.err (!%p300_p9)
}
  0x17   :  { %19 = dma.hbm_to_vmem [thread:$0]  %s367_s0, 128, %s17_s20, [#allocation3]  }
  0x18   :  { %s312_s26 = scalar_lea.vmem %s38_s22, 640  ;;  %p317_p11 = scmp.lt.s32.totalorder %s38_s22, %s38_s22 }
  0x19   :  { %p313_p10 = scmp.ne.s32.totalorder %s38_s22, %s312_s26  ;;  %p318_p12 = scmp.lt.s32.totalorder %s312_s26, %s312_s26 }
  0x1b   :  { %p319_p13 = por %p318_p12, %p317_p11 }
  0x1d   :  { %p320_p0 = pnand %p319_p13, %p313_p10 }
  0x1f   :  { %323 = shalt.err (!%p320_p0)
}
  0x20   :  { %43 = dma.hbm_to_vmem [thread:$0]  %s369_s2, 640, %s38_s22, [#allocation5], %s329_s15, %s329_s15, %s330_s16  }
  0x21   :  { %324 = dma.done.wait [#allocation3], 128  }
  0x22   :  { %325 = vsyncadd [#allocation3], 4294967168 }
  0x23   :  { %326 = dma.done.wait [#allocation5], 1024  }
  0x24   :  { %327 = vsyncadd [#allocation5], 4294966272  ;;  %v333_v0 = vmov 0.0   ;;  %vm334_vm0 = vmmov 0   ;;  %v55_v1 = vld [vmem:[#allocation4 + $0x8] sm:$0xff]  ;;  %v54_v2 = vld [vmem:[#allocation4] sm:$0xff] }
  0x25   :  { %239 = vmatprep.subr.mxu0 %v333_v0  ;;  %243 = vmatprep.mubr.msk.f32.mxu0 %vm334_vm0, %v333_v0  ;;  %v53_v3 = vld [vmem:[#allocation2] sm:$0xff]  ;;  %vm61_vm1 = vcmask 130048   ;;  %v139_v4 = vld [vmem:[#allocation6 + $0x18] sm:$0xff]  ;;  %v138_v5 = vld [vmem:[#allocation6 + $0x10] sm:$0xff]  ;;  %vm145_vm2 = vcmask 261120   ;;  %vm219_vm3 = vcmask 31744  }
  0x26   :  { %246 = vmatprep.subr.mxu1 %v333_v0  ;;  %254 = vmatprep.mubr.msk.f32.mxu1 %vm334_vm0, %v333_v0  ;;  %v137_v6 = vld [vmem:[#allocation6 + $0x8] sm:$0xff]  ;;  %v136_v7 = vld [vmem:[#allocation6] sm:$0xff]  ;;  %v227_v8 = vld [vmem:[#allocation4 + $0x10] ss:$0 sm:$0xff] }
  0x27   :  { %240 = vmatpush3.msra.mxu0 %v55_v1  ;;  %247 = vmatpush3.msra.mxu1 %v139_v4  ;;  %v229_v13 = vld [vmem:[#allocation6 + $0x20] ss:$0 sm:$0xff] }
  0x28   :  { %241 = vmatprep.subr.mxu0 %v333_v0  ;;  %248 = vmatprep.subr.mxu1 %v333_v0 }
  0x29   :  { %242 = vmatpush3.msra.mxu0 %v54_v2  ;;  %249 = vmatpush3.msra.mxu1 %v138_v5 }
  0x2a   :  { %244 = vmatmul.mubr.msk.f32.vlgmr.msra.gmra.mxu0 %vm61_vm1, %v53_v3  ;;  %250 = vmatprep.subr.mxu1 %v333_v0 }
  0x2b   :  { %251 = vmatpush3.msra.mxu1 %v137_v6 }
  0x2c   :  { %252 = vmatprep.subr.mxu1 %v333_v0 }
  0x2d   :  { %253 = vmatpush3.msra.mxu1 %v136_v7 }
  0xea   :  { %v131_v9 = vpop.f32.mrf.mxu0 }
  0xeb   :  { %v132_v10 = vadd.f32 %v227_v8, %v131_v9 }
  0xec   :  { %v245_v11 = vpop.f32.mrf.mxu0 }
  0xed   :  { %v135_v12 = vmax.f32 %v132_v10, 0.0 }
  0xef   :  { %255 = vmatmul.mubr.msk.f32.vlgmr.msra.gmra.mxu1 %vm145_vm2, %v135_v12 }
 0x1af   :  { %v215_v14 = vpop.f32.mrf.mxu1 }
 0x1b0   :  { %v216_v15 = vadd.f32 %v229_v13, %v215_v14 }
 0x1b1   :  { %v256_v16 = vpop.f32.mrf.mxu1 }
 0x1b2   :  { %220 = vst.msk [vmem:[%s370_s3] sm:$0xff] %vm219_vm3, %v216_v15 }
 0x1b3   :  { %225 = vsyncpa [#allocation3], 1 }
 0x1b4   :  { %226 = vsyncpa [#allocation5], 1 }

</bundles_post_ra>
